<compile_context>
chip_gen: v6e
topology: v6e:2x2x1
jax: 0.10.0
libtpu: 0.0.40
codegen_flags: <defaults>
</compile_context>

<pallas_src>
import random

import jax
import jax.numpy as jnp
from jax.experimental import pallas as pl
from jax.experimental.pallas import tpu as pltpu


BP = 8  # batch padded to the f32 sublane count


# ---------------------------------------------------------------------------
# Pallas kernels
# ---------------------------------------------------------------------------
def _proj_kernel(x_ref, w_ref, b_ref, o_ref):
    # One-shot input projection X @ W + b (hoisted out of the recurrence).
    o_ref[...] = (jnp.dot(x_ref[...], w_ref[...],
                          preferred_element_type=jnp.float32) + b_ref[...])


def project(x, w, b):
    M, N = x.shape[0], w.shape[1]
    return pl.pallas_call(
        _proj_kernel,
        out_shape=jax.ShapeDtypeStruct((M, N), jnp.float32),
    )(x, w, b)


def _lstm_gates(gates, c_prev):
    """LSTM cell nonlinearity, torch gate order (i, f, g, o)."""
    H = c_prev.shape[1]
    i = jax.nn.sigmoid(gates[:, 0 * H:1 * H])
    f = jax.nn.sigmoid(gates[:, 1 * H:2 * H])
    g = jnp.tanh(gates[:, 2 * H:3 * H])
    o = jax.nn.sigmoid(gates[:, 3 * H:4 * H])
    c_new = f * c_prev + i * g
    h_new = o * jnp.tanh(c_new)
    return h_new, c_new


def _encoder_kernel(xg_ref, whh_ref, h_out_ref, c_out_ref, h_scr, c_scr):
    t = pl.program_id(0)

    @pl.when(t == 0)
    def _():
        h_scr[...] = jnp.zeros_like(h_scr)
        c_scr[...] = jnp.zeros_like(c_scr)

    gates = xg_ref[0] + jnp.dot(h_scr[...], whh_ref[...],
                                preferred_element_type=jnp.float32)
    h_new, c_new = _lstm_gates(gates, c_scr[...])
    h_scr[...] = h_new
    c_scr[...] = c_new

    @pl.when(t == pl.num_programs(0) - 1)
    def _():
        h_out_ref[...] = h_new
        c_out_ref[...] = c_new


def encoder_run(xg_all, w_hh):
    S, B, fourH = xg_all.shape
    H = fourH // 4
    return pl.pallas_call(
        _encoder_kernel,
        out_shape=(jax.ShapeDtypeStruct((B, H), jnp.float32),
                   jax.ShapeDtypeStruct((B, H), jnp.float32)),
        grid_spec=pltpu.PrefetchScalarGridSpec(
            num_scalar_prefetch=0,
            grid=(S,),
            in_specs=[
                pl.BlockSpec((1, B, fourH), lambda t: (t, 0, 0)),
                pl.BlockSpec((H, fourH), lambda t: (0, 0)),
            ],
            out_specs=[
                pl.BlockSpec((B, H), lambda t: (0, 0)),
                pl.BlockSpec((B, H), lambda t: (0, 0)),
            ],
            scratch_shapes=[pltpu.VMEM((B, H), jnp.float32),
                            pltpu.VMEM((B, H), jnp.float32)],
        ),
        compiler_params=pltpu.CompilerParams(
            dimension_semantics=("arbitrary",)),
    )(xg_all, w_hh)


def _decoder_kernel(sel_ref, tf_xg_ref, h0_ref, c0_ref, whh_ref, wfc_ref,
                    bfc_ref, xtab_ref, out_ref, h_scr, c_scr, xg_scr):
    s = pl.program_id(0)

    @pl.when(s == 0)
    def _():
        h_scr[...] = h0_ref[...]
        c_scr[...] = c0_ref[...]
        xg_scr[...] = jnp.zeros_like(xg_scr)

    # Teacher forcing: blend the precomputed teacher-forced input projection
    # for this step with the greedy-feedback projection from the previous step.
    tf = (sel_ref[s] > 0).astype(jnp.float32)
    xg = tf * tf_xg_ref[0] + (1.0 - tf) * xg_scr[...]

    gates = xg + jnp.dot(h_scr[...], whh_ref[...],
                         preferred_element_type=jnp.float32)
    h_new, c_new = _lstm_gates(gates, c_scr[...])
    h_scr[...] = h_new
    c_scr[...] = c_new

    # Fused output projection, written to the time-indexed output block.
    logits = jnp.dot(h_new, wfc_ref[...],
                     preferred_element_type=jnp.float32) + bfc_ref[...]
    out_ref[0] = logits

    # Greedy feedback: first-max argmax -> one-hot -> (embed @ W_ih + b) table.
    V = logits.shape[1]
    col = jax.lax.broadcasted_iota(jnp.int32, logits.shape, 1)
    mx = jnp.max(logits, axis=-1, keepdims=True)
    amax = jnp.min(jnp.where(logits == mx, col, V), axis=-1, keepdims=True)
    onehot = (col == amax).astype(jnp.float32)
    xg_scr[...] = jnp.dot(onehot, xtab_ref[...],
                          preferred_element_type=jnp.float32)


def decoder_run(sel, tf_xg, h0, c0, w_hh, w_fc, b_fc, xproj_table):
    Tm1, B, fourH = tf_xg.shape
    H = fourH // 4
    V = w_fc.shape[1]
    return pl.pallas_call(
        _decoder_kernel,
        out_shape=jax.ShapeDtypeStruct((Tm1, B, V), jnp.float32),
        grid_spec=pltpu.PrefetchScalarGridSpec(
            num_scalar_prefetch=1,            # sel mask -> SMEM
            grid=(Tm1,),
            in_specs=[
                pl.BlockSpec((1, B, fourH), lambda s, sel: (s, 0, 0)),
                pl.BlockSpec((B, H), lambda s, sel: (0, 0)),
                pl.BlockSpec((B, H), lambda s, sel: (0, 0)),
                pl.BlockSpec((H, fourH), lambda s, sel: (0, 0)),
                pl.BlockSpec((H, V), lambda s, sel: (0, 0)),
                pl.BlockSpec((1, V), lambda s, sel: (0, 0)),
                pl.BlockSpec((V, fourH), lambda s, sel: (0, 0)),
            ],
            out_specs=pl.BlockSpec((1, B, V), lambda s, sel: (s, 0, 0)),
            scratch_shapes=[pltpu.VMEM((B, H), jnp.float32),
                            pltpu.VMEM((B, H), jnp.float32),
                            pltpu.VMEM((B, fourH), jnp.float32)],
        ),
        compiler_params=pltpu.CompilerParams(
            dimension_semantics=("arbitrary",)),
    )(sel, tf_xg, h0, c0, w_hh, w_fc, b_fc, xproj_table)


# ---------------------------------------------------------------------------
# Parameter construction (deterministic, synthetic)
# ---------------------------------------------------------------------------
def make_params(key, vocab, emb, hidden):
    keys = jax.random.split(key, 10)
    s = 0.1

    def rnd(k, shape):
        return (s * jax.random.normal(k, shape)).astype(jnp.float32)

    enc = dict(
        embed=rnd(keys[0], (vocab, emb)),
        w_ih=rnd(keys[1], (emb, 4 * hidden)),
        w_hh=rnd(keys[2], (hidden, 4 * hidden)),
        b=rnd(keys[3], (1, 4 * hidden)),       # b_ih + b_hh combined
    )
    dec = dict(
        embed=rnd(keys[4], (vocab, emb)),
        w_ih=rnd(keys[5], (emb, 4 * hidden)),
        w_hh=rnd(keys[6], (hidden, 4 * hidden)),
        b=rnd(keys[7], (1, 4 * hidden)),
        w_fc=rnd(keys[8], (hidden, vocab)),
        b_fc=rnd(keys[9], (1, vocab)),
    )
    return dict(enc=enc, dec=dec)


# ---------------------------------------------------------------------------
# Seq2Seq forward (mirrors the PyTorch module semantics)
# ---------------------------------------------------------------------------
@jax.jit
def _seq2seq_core(params, src_pad, trg_pad, sel):
    enc, dec = params["enc"], params["dec"]
    BPp, S = src_pad.shape
    T = trg_pad.shape[1]
    H = enc["w_hh"].shape[0]
    E = enc["embed"].shape[1]

    # ---- encoder: hoist x @ W_ih (+b) for all timesteps into one matmul ----
    src_emb = jnp.take(enc["embed"], src_pad, axis=0)              # [BP, S, E]
    x_enc = jnp.transpose(src_emb, (1, 0, 2)).reshape(S * BPp, E)
    xg_enc = project(x_enc, enc["w_ih"], enc["b"]).reshape(S, BPp, 4 * H)
    h, c = encoder_run(xg_enc, enc["w_hh"])                        # [BP, H] x2

    # ---- decoder: precompute teacher-forced input projections + feedback ---
    tf_tok = trg_pad[:, :T - 1]                                    # [BP, T-1]
    tf_emb = jnp.take(dec["embed"], tf_tok, axis=0)                # [BP,T-1,E]
    x_dec = jnp.transpose(tf_emb, (1, 0, 2)).reshape((T - 1) * BPp, E)
    tf_xg = project(x_dec, dec["w_ih"], dec["b"]).reshape(T - 1, BPp, 4 * H)
    xproj_table = project(dec["embed"], dec["w_ih"], dec["b"])     # [V, 4H]

    logits = decoder_run(sel, tf_xg, h, c, dec["w_hh"], dec["w_fc"],
                         dec["b_fc"], xproj_table)                 # [T-1,BP,V]
    return jnp.transpose(logits, (1, 0, 2))                        # [BP,T-1,V]


def seq2seq_forward(params, src, trg, teacher_forcing_ratio=0.5, seed=0):
    B, S = src.shape
    T = trg.shape[1]

    # Host-side coin flips, one per decode step, as in the reference module.
    # TODO(synk): `random.random()` in the PyTorch forward has no in-kernel
    # equivalent; it is reproduced host-side and passed in as the `sel` mask.
    rng = random.Random(seed)
    coins = [rng.random() < teacher_forcing_ratio for _ in range(1, T)]
    sel = [1] + [int(coins[s - 1]) for s in range(1, T - 1)]   # sel[0]=trg[:,0]
    sel = jnp.asarray(sel, dtype=jnp.int32)

    src_pad = jnp.zeros((BP, S), jnp.int32).at[:B].set(src)
    trg_pad = jnp.zeros((BP, T), jnp.int32).at[:B].set(trg)

    out = _seq2seq_core(params, src_pad, trg_pad, sel)             # [BP,T-1,V]
    return out[:B]                                                 # [B, T-1, V]


# ---------------------------------------------------------------------------
if __name__ == "__main__":
    B, SRC_LEN, TRG_LEN = 2, 8, 8
    VOCAB, EMB, HIDDEN = 32, 16, 32

    key = jax.random.PRNGKey(0)
    kp, ks, kt = jax.random.split(key, 3)

    params = make_params(kp, VOCAB, EMB, HIDDEN)
    src = jax.random.randint(ks, (B, SRC_LEN), 0, VOCAB, dtype=jnp.int32)
    trg = jax.random.randint(kt, (B, TRG_LEN), 0, VOCAB, dtype=jnp.int32)

    out = seq2seq_forward(params, src, trg, teacher_forcing_ratio=0.5, seed=0)
    out = jax.block_until_ready(out)

    assert out.shape == (B, TRG_LEN - 1, VOCAB), out.shape
    assert out.dtype == jnp.float32
    print("KERNEL_OK")
</pallas_src>

<mosaic_0001>
module attributes {stable_mosaic.version = 11 : i64} {
  func.func @_proj_kernel(%arg0: memref<32x16xf32, #tpu.memory_space<vmem>>, %arg1: memref<16x128xf32, #tpu.memory_space<vmem>>, %arg2: memref<1x128xf32, #tpu.memory_space<vmem>>, %arg3: memref<32x128xf32, #tpu.memory_space<vmem>>) attributes {dimension_semantics = [], scalar_prefetch = 0 : i64, scratch_operands = 0 : i64, tpu.core_type = #tpu.core_type<tc>} {
    %c0 = arith.constant 0 : index
    %c0_0 = arith.constant 0 : index
    %0 = vector.load %arg0[%c0, %c0_0] : memref<32x16xf32, #tpu.memory_space<vmem>>, vector<32x16xf32>
    %c0_1 = arith.constant 0 : index
    %c0_2 = arith.constant 0 : index
    %1 = vector.load %arg1[%c0_1, %c0_2] : memref<16x128xf32, #tpu.memory_space<vmem>>, vector<16x128xf32>
    %cst = arith.constant dense<0.000000e+00> : vector<32x128xf32>
    %2 = tpu.matmul %0, %1, %cst {dimension_numbers = #tpu.dot_dimension_numbers<[1], [0], [0], [1], [0, 0, 1, 1], [], []>} : vector<32x16xf32>, vector<16x128xf32>, vector<32x128xf32> -> vector<32x128xf32>
    %c0_3 = arith.constant 0 : index
    %c0_4 = arith.constant 0 : index
    %3 = vector.load %arg2[%c0_3, %c0_4] : memref<1x128xf32, #tpu.memory_space<vmem>>, vector<1x128xf32>
    %4 = vector.broadcast %3 : vector<1x128xf32> to vector<32x128xf32>
    %5 = arith.addf %2, %4 : vector<32x128xf32>
    %c0_5 = arith.constant 0 : index
    %c0_6 = arith.constant 0 : index
    %6 = vector.load %arg3[%c0_5, %c0_6] : memref<32x128xf32, #tpu.memory_space<vmem>>, vector<32x128xf32>
    tpu.vector_store %arg3[%c0_5, %c0_6], %5 {strides = array<i32>} : memref<32x128xf32, #tpu.memory_space<vmem>>, vector<32x128xf32>,
    return
  }
}

module attributes {stable_mosaic.version = 11 : i64} {
  func.func @_proj_kernel(%arg0: memref<56x16xf32, #tpu.memory_space<vmem>>, %arg1: memref<16x128xf32, #tpu.memory_space<vmem>>, %arg2: memref<1x128xf32, #tpu.memory_space<vmem>>, %arg3: memref<56x128xf32, #tpu.memory_space<vmem>>) attributes {dimension_semantics = [], scalar_prefetch = 0 : i64, scratch_operands = 0 : i64, tpu.core_type = #tpu.core_type<tc>} {
    %c0 = arith.constant 0 : index
    %c0_0 = arith.constant 0 : index
    %0 = vector.load %arg0[%c0, %c0_0] : memref<56x16xf32, #tpu.memory_space<vmem>>, vector<56x16xf32>
    %c0_1 = arith.constant 0 : index
    %c0_2 = arith.constant 0 : index
    %1 = vector.load %arg1[%c0_1, %c0_2] : memref<16x128xf32, #tpu.memory_space<vmem>>, vector<16x128xf32>
    %cst = arith.constant dense<0.000000e+00> : vector<56x128xf32>
    %2 = tpu.matmul %0, %1, %cst {dimension_numbers = #tpu.dot_dimension_numbers<[1], [0], [0], [1], [0, 0, 1, 1], [], []>} : vector<56x16xf32>, vector<16x128xf32>, vector<56x128xf32> -> vector<56x128xf32>
    %c0_3 = arith.constant 0 : index
    %c0_4 = arith.constant 0 : index
    %3 = vector.load %arg2[%c0_3, %c0_4] : memref<1x128xf32, #tpu.memory_space<vmem>>, vector<1x128xf32>
    %4 = vector.broadcast %3 : vector<1x128xf32> to vector<56x128xf32>
    %5 = arith.addf %2, %4 : vector<56x128xf32>
    %c0_5 = arith.constant 0 : index
    %c0_6 = arith.constant 0 : index
    %6 = vector.load %arg3[%c0_5, %c0_6] : memref<56x128xf32, #tpu.memory_space<vmem>>, vector<56x128xf32>
    tpu.vector_store %arg3[%c0_5, %c0_6], %5 {strides = array<i32>} : memref<56x128xf32, #tpu.memory_space<vmem>>, vector<56x128xf32>,
    return
  }
}

module attributes {stable_mosaic.version = 11 : i64} {
  func.func @_proj_kernel(%arg0: memref<64x16xf32, #tpu.memory_space<vmem>>, %arg1: memref<16x128xf32, #tpu.memory_space<vmem>>, %arg2: memref<1x128xf32, #tpu.memory_space<vmem>>, %arg3: memref<64x128xf32, #tpu.memory_space<vmem>>) attributes {dimension_semantics = [], scalar_prefetch = 0 : i64, scratch_operands = 0 : i64, tpu.core_type = #tpu.core_type<tc>} {
    %c0 = arith.constant 0 : index
    %c0_0 = arith.constant 0 : index
    %0 = vector.load %arg0[%c0, %c0_0] : memref<64x16xf32, #tpu.memory_space<vmem>>, vector<64x16xf32>
    %c0_1 = arith.constant 0 : index
    %c0_2 = arith.constant 0 : index
    %1 = vector.load %arg1[%c0_1, %c0_2] : memref<16x128xf32, #tpu.memory_space<vmem>>, vector<16x128xf32>
    %cst = arith.constant dense<0.000000e+00> : vector<64x128xf32>
    %2 = tpu.matmul %0, %1, %cst {dimension_numbers = #tpu.dot_dimension_numbers<[1], [0], [0], [1], [0, 0, 1, 1], [], []>} : vector<64x16xf32>, vector<16x128xf32>, vector<64x128xf32> -> vector<64x128xf32>
    %c0_3 = arith.constant 0 : index
    %c0_4 = arith.constant 0 : index
    %3 = vector.load %arg2[%c0_3, %c0_4] : memref<1x128xf32, #tpu.memory_space<vmem>>, vector<1x128xf32>
    %4 = vector.broadcast %3 : vector<1x128xf32> to vector<64x128xf32>
    %5 = arith.addf %2, %4 : vector<64x128xf32>
    %c0_5 = arith.constant 0 : index
    %c0_6 = arith.constant 0 : index
    %6 = vector.load %arg3[%c0_5, %c0_6] : memref<64x128xf32, #tpu.memory_space<vmem>>, vector<64x128xf32>
    tpu.vector_store %arg3[%c0_5, %c0_6], %5 {strides = array<i32>} : memref<64x128xf32, #tpu.memory_space<vmem>>, vector<64x128xf32>,
    return
  }
}

module attributes {stable_mosaic.version = 11 : i64} {
  func.func @_encoder_kernel(%arg0: i32, %arg1: memref<1x8x128xf32, #tpu.memory_space<vmem>>, %arg2: memref<32x128xf32, #tpu.memory_space<vmem>>, %arg3: memref<8x32xf32, #tpu.memory_space<vmem>>, %arg4: memref<8x32xf32, #tpu.memory_space<vmem>>, %arg5: memref<8x32xf32, #tpu.memory_space<vmem>>, %arg6: memref<8x32xf32, #tpu.memory_space<vmem>>) attributes {dimension_semantics = [#tpu.dimension_semantics<arbitrary>], iteration_bounds = array<i64: 8>, scalar_prefetch = 0 : i64, scratch_operands = 2 : i64, tpu.core_type = #tpu.core_type<tc>, window_params = [{transform_indices = @transform_0, window_bounds = array<i64: 1, 8, 128>}, {pipeline_mode = #tpu.pipeline_mode<synchronous>, transform_indices = @transform_1, window_bounds = array<i64: 32, 128>}, {pipeline_mode = #tpu.pipeline_mode<synchronous>, transform_indices = @transform_2, window_bounds = array<i64: 8, 32>}, {pipeline_mode = #tpu.pipeline_mode<synchronous>, transform_indices = @transform_3, window_bounds = array<i64: 8, 32>}]} {
    %c0_i32 = arith.constant 0 : i32
    %0 = arith.cmpi eq, %arg0, %c0_i32 : i32
    %1 = arith.extui %0 : i1 to i32
    %c0_i32_0 = arith.constant 0 : i32
    %2 = arith.cmpi ne, %1, %c0_i32_0 : i32
    scf.if %2 {
      %cst_17 = arith.constant 0.000000e+00 : f32
      %40 = vector.broadcast %cst_17 : f32 to vector<8x32xf32>
      %c0_18 = arith.constant 0 : index
      %c0_19 = arith.constant 0 : index
      %41 = vector.load %arg5[%c0_18, %c0_19] : memref<8x32xf32, #tpu.memory_space<vmem>>, vector<8x32xf32>
      tpu.vector_store %arg5[%c0_18, %c0_19], %40 {strides = array<i32>} : memref<8x32xf32, #tpu.memory_space<vmem>>, vector<8x32xf32>,
      %cst_20 = arith.constant 0.000000e+00 : f32
      %42 = vector.broadcast %cst_20 : f32 to vector<8x32xf32>
      %c0_21 = arith.constant 0 : index
      %c0_22 = arith.constant 0 : index
      %43 = vector.load %arg6[%c0_21, %c0_22] : memref<8x32xf32, #tpu.memory_space<vmem>>, vector<8x32xf32>
      tpu.vector_store %arg6[%c0_21, %c0_22], %42 {strides = array<i32>} : memref<8x32xf32, #tpu.memory_space<vmem>>, vector<8x32xf32>,
    } else {
    }
    %c0 = arith.constant 0 : index
    %c0_1 = arith.constant 0 : index
    %c0_2 = arith.constant 0 : index
    %3 = vector.load %arg1[%c0, %c0_1, %c0_2] : memref<1x8x128xf32, #tpu.memory_space<vmem>>, vector<1x8x128xf32>
    %4 = vector.shape_cast %3 : vector<1x8x128xf32> to vector<8x128xf32>
    %c0_3 = arith.constant 0 : index
    %c0_4 = arith.constant 0 : index
    %5 = vector.load %arg5[%c0_3, %c0_4] : memref<8x32xf32, #tpu.memory_space<vmem>>, vector<8x32xf32>
    %c0_5 = arith.constant 0 : index
    %c0_6 = arith.constant 0 : index
    %6 = vector.load %arg2[%c0_5, %c0_6] : memref<32x128xf32, #tpu.memory_space<vmem>>, vector<32x128xf32>
    %cst = arith.constant dense<0.000000e+00> : vector<8x128xf32>
    %7 = tpu.matmul %5, %6, %cst {dimension_numbers = #tpu.dot_dimension_numbers<[1], [0], [0], [1], [0, 0, 1, 1], [], []>} : vector<8x32xf32>, vector<32x128xf32>, vector<8x128xf32> -> vector<8x128xf32>
    %8 = arith.addf %4, %7 : vector<8x128xf32>
    %c0_7 = arith.constant 0 : index
    %c0_8 = arith.constant 0 : index
    %9 = vector.load %arg6[%c0_7, %c0_8] : memref<8x32xf32, #tpu.memory_space<vmem>>, vector<8x32xf32>
    %10 = vector.extract_strided_slice %8 {offsets = [0, 0], sizes = [8, 32], strides = [1, 1]} : vector<8x128xf32> to vector<8x32xf32>
    %11 = arith.negf %10 : vector<8x32xf32>
    %12 = math.exp %11 : vector<8x32xf32>
    %cst_9 = arith.constant 1.000000e+00 : f32
    %13 = vector.broadcast %cst_9 : f32 to vector<8x32xf32>
    %14 = arith.addf %13, %12 : vector<8x32xf32>
    %15 = arith.divf %13, %14 : vector<8x32xf32>
    %16 = vector.extract_strided_slice %8 {offsets = [0, 32], sizes = [8, 32], strides = [1, 1]} : vector<8x128xf32> to vector<8x32xf32>
    %17 = arith.negf %16 : vector<8x32xf32>
    %18 = math.exp %17 : vector<8x32xf32>
    %cst_10 = arith.constant 1.000000e+00 : f32
    %19 = vector.broadcast %cst_10 : f32 to vector<8x32xf32>
    %20 = arith.addf %19, %18 : vector<8x32xf32>
    %21 = arith.divf %19, %20 : vector<8x32xf32>
    %22 = vector.extract_strided_slice %8 {offsets = [0, 64], sizes = [8, 32], strides = [1, 1]} : vector<8x128xf32> to vector<8x32xf32>
    %23 = math.tanh %22 : vector<8x32xf32>
    %24 = vector.extract_strided_slice %8 {offsets = [0, 96], sizes = [8, 32], strides = [1, 1]} : vector<8x128xf32> to vector<8x32xf32>
    %25 = arith.negf %24 : vector<8x32xf32>
    %26 = math.exp %25 : vector<8x32xf32>
    %cst_11 = arith.constant 1.000000e+00 : f32
    %27 = vector.broadcast %cst_11 : f32 to vector<8x32xf32>
    %28 = arith.addf %27, %26 : vector<8x32xf32>
    %29 = arith.divf %27, %28 : vector<8x32xf32>
    %30 = arith.mulf %21, %9 : vector<8x32xf32>
    %31 = arith.mulf %15, %23 : vector<8x32xf32>
    %32 = arith.addf %30, %31 : vector<8x32xf32>
    %33 = math.tanh %32 : vector<8x32xf32>
    %34 = arith.mulf %29, %33 : vector<8x32xf32>
    %c0_12 = arith.constant 0 : index
    %c0_13 = arith.constant 0 : index
    %35 = vector.load %arg5[%c0_12, %c0_13] : memref<8x32xf32, #tpu.memory_space<vmem>>, vector<8x32xf32>
    tpu.vector_store %arg5[%c0_12, %c0_13], %34 {strides = array<i32>} : memref<8x32xf32, #tpu.memory_space<vmem>>, vector<8x32xf32>,
    %c0_14 = arith.constant 0 : index
    %c0_15 = arith.constant 0 : index
    %36 = vector.load %arg6[%c0_14, %c0_15] : memref<8x32xf32, #tpu.memory_space<vmem>>, vector<8x32xf32>
    tpu.vector_store %arg6[%c0_14, %c0_15], %32 {strides = array<i32>} : memref<8x32xf32, #tpu.memory_space<vmem>>, vector<8x32xf32>,
    %c7_i32 = arith.constant 7 : i32
    %37 = arith.cmpi eq, %arg0, %c7_i32 : i32
    %38 = arith.extui %37 : i1 to i32
    %c0_i32_16 = arith.constant 0 : i32
    %39 = arith.cmpi ne, %38, %c0_i32_16 : i32
    scf.if %39 {
      %c0_17 = arith.constant 0 : index
      %c0_18 = arith.constant 0 : index
      %40 = vector.load %arg3[%c0_17, %c0_18] : memref<8x32xf32, #tpu.memory_space<vmem>>, vector<8x32xf32>
      tpu.vector_store %arg3[%c0_17, %c0_18], %34 {strides = array<i32>} : memref<8x32xf32, #tpu.memory_space<vmem>>, vector<8x32xf32>,
      %c0_19 = arith.constant 0 : index
      %c0_20 = arith.constant 0 : index
      %41 = vector.load %arg4[%c0_19, %c0_20] : memref<8x32xf32, #tpu.memory_space<vmem>>, vector<8x32xf32>
      tpu.vector_store %arg4[%c0_19, %c0_20], %32 {strides = array<i32>} : memref<8x32xf32, #tpu.memory_space<vmem>>, vector<8x32xf32>,
    } else {
    }
    return
  }
  func.func @transform_0(%arg0: i32) -> (i32, i32, i32) {
    %c0_i32 = arith.constant 0 : i32
    %c0_i32_0 = arith.constant 0 : i32
    %c0_i32_1 = arith.constant 0 : i32
    return %arg0, %c0_i32, %c0_i32_0 : i32, i32, i32
  }
  func.func @transform_1(%arg0: i32) -> (i32, i32) {
    %c0_i32 = arith.constant 0 : i32
    %c0_i32_0 = arith.constant 0 : i32
    %c0_i32_1 = arith.constant 0 : i32
    return %c0_i32, %c0_i32_0 : i32, i32
  }
  func.func @transform_2(%arg0: i32) -> (i32, i32) {
    %c0_i32 = arith.constant 0 : i32
    %c0_i32_0 = arith.constant 0 : i32
    %c0_i32_1 = arith.constant 0 : i32
    return %c0_i32, %c0_i32_0 : i32, i32
  }
  func.func @transform_3(%arg0: i32) -> (i32, i32) {
    %c0_i32 = arith.constant 0 : i32
    %c0_i32_0 = arith.constant 0 : i32
    %c0_i32_1 = arith.constant 0 : i32
    return %c0_i32, %c0_i32_0 : i32, i32
  }
}

module attributes {stable_mosaic.version = 11 : i64} {
  func.func @_decoder_kernel(%arg0: i32, %arg1: memref<7xi32, #tpu.memory_space<smem>>, %arg2: memref<1x8x128xf32, #tpu.memory_space<vmem>>, %arg3: memref<8x32xf32, #tpu.memory_space<vmem>>, %arg4: memref<8x32xf32, #tpu.memory_space<vmem>>, %arg5: memref<32x128xf32, #tpu.memory_space<vmem>>, %arg6: memref<32x32xf32, #tpu.memory_space<vmem>>, %arg7: memref<1x32xf32, #tpu.memory_space<vmem>>, %arg8: memref<32x128xf32, #tpu.memory_space<vmem>>, %arg9: memref<1x8x32xf32, #tpu.memory_space<vmem>>, %arg10: memref<8x32xf32, #tpu.memory_space<vmem>>, %arg11: memref<8x32xf32, #tpu.memory_space<vmem>>, %arg12: memref<8x128xf32, #tpu.memory_space<vmem>>) attributes {dimension_semantics = [#tpu.dimension_semantics<arbitrary>], iteration_bounds = array<i64: 7>, scalar_prefetch = 1 : i64, scratch_operands = 3 : i64, tpu.core_type = #tpu.core_type<tc>, window_params = [{transform_indices = @transform_0, window_bounds = array<i64: 1, 8, 128>}, {pipeline_mode = #tpu.pipeline_mode<synchronous>, transform_indices = @transform_1, window_bounds = array<i64: 8, 32>}, {pipeline_mode = #tpu.pipeline_mode<synchronous>, transform_indices = @transform_2, window_bounds = array<i64: 8, 32>}, {pipeline_mode = #tpu.pipeline_mode<synchronous>, transform_indices = @transform_3, window_bounds = array<i64: 32, 128>}, {pipeline_mode = #tpu.pipeline_mode<synchronous>, transform_indices = @transform_4, window_bounds = array<i64: 32, 32>}, {pipeline_mode = #tpu.pipeline_mode<synchronous>, transform_indices = @transform_5, window_bounds = array<i64: 1, 32>}, {pipeline_mode = #tpu.pipeline_mode<synchronous>, transform_indices = @transform_6, window_bounds = array<i64: 32, 128>}, {transform_indices = @transform_7, window_bounds = array<i64: 1, 8, 32>}]} {
    %c0_i32 = arith.constant 0 : i32
    %0 = arith.cmpi eq, %arg0, %c0_i32 : i32
    %1 = arith.extui %0 : i1 to i32
    %c0_i32_0 = arith.constant 0 : i32
    %2 = arith.cmpi ne, %1, %c0_i32_0 : i32
    scf.if %2 {
      %c0_35 = arith.constant 0 : index
      %c0_36 = arith.constant 0 : index
      %73 = vector.load %arg3[%c0_35, %c0_36] : memref<8x32xf32, #tpu.memory_space<vmem>>, vector<8x32xf32>
      %c0_37 = arith.constant 0 : index
      %c0_38 = arith.constant 0 : index
      %74 = vector.load %arg10[%c0_37, %c0_38] : memref<8x32xf32, #tpu.memory_space<vmem>>, vector<8x32xf32>
      tpu.vector_store %arg10[%c0_37, %c0_38], %73 {strides = array<i32>} : memref<8x32xf32, #tpu.memory_space<vmem>>, vector<8x32xf32>,
      %c0_39 = arith.constant 0 : index
      %c0_40 = arith.constant 0 : index
      %75 = vector.load %arg4[%c0_39, %c0_40] : memref<8x32xf32, #tpu.memory_space<vmem>>, vector<8x32xf32>
      %c0_41 = arith.constant 0 : index
      %c0_42 = arith.constant 0 : index
      %76 = vector.load %arg11[%c0_41, %c0_42] : memref<8x32xf32, #tpu.memory_space<vmem>>, vector<8x32xf32>
      tpu.vector_store %arg11[%c0_41, %c0_42], %75 {strides = array<i32>} : memref<8x32xf32, #tpu.memory_space<vmem>>, vector<8x32xf32>,
      %cst_43 = arith.constant 0.000000e+00 : f32
      %77 = vector.broadcast %cst_43 : f32 to vector<8x128xf32>
      %c0_44 = arith.constant 0 : index
      %c0_45 = arith.constant 0 : index
      %78 = vector.load %arg12[%c0_44, %c0_45] : memref<8x128xf32, #tpu.memory_space<vmem>>, vector<8x128xf32>
      tpu.vector_store %arg12[%c0_44, %c0_45], %77 {strides = array<i32>} : memref<8x128xf32, #tpu.memory_space<vmem>>, vector<8x128xf32>,
    } else {
    }
    %3 = arith.index_cast %arg0 : i32 to index
    %4 = memref.load %arg1[%3] : memref<7xi32, #tpu.memory_space<smem>>
    %c0_i32_1 = arith.constant 0 : i32
    %5 = arith.cmpi sgt, %4, %c0_i32_1 : i32
    %6 = arith.extui %5 : i1 to i32
    %7 = arith.sitofp %6 : i32 to f32
    %c0 = arith.constant 0 : index
    %c0_2 = arith.constant 0 : index
    %c0_3 = arith.constant 0 : index
    %8 = vector.load %arg2[%c0, %c0_2, %c0_3] : memref<1x8x128xf32, #tpu.memory_space<vmem>>, vector<1x8x128xf32>
    %9 = vector.shape_cast %8 : vector<1x8x128xf32> to vector<8x128xf32>
    %10 = vector.broadcast %7 : f32 to vector<8x128xf32>
    %11 = arith.mulf %10, %9 : vector<8x128xf32>
    %cst = arith.constant 1.000000e+00 : f32
    %12 = arith.subf %cst, %7 : f32
    %c0_4 = arith.constant 0 : index
    %c0_5 = arith.constant 0 : index
    %13 = vector.load %arg12[%c0_4, %c0_5] : memref<8x128xf32, #tpu.memory_space<vmem>>, vector<8x128xf32>
    %14 = vector.broadcast %12 : f32 to vector<8x128xf32>
    %15 = arith.mulf %14, %13 : vector<8x128xf32>
    %16 = arith.addf %11, %15 : vector<8x128xf32>
    %c0_6 = arith.constant 0 : index
    %c0_7 = arith.constant 0 : index
    %17 = vector.load %arg10[%c0_6, %c0_7] : memref<8x32xf32, #tpu.memory_space<vmem>>, vector<8x32xf32>
    %c0_8 = arith.constant 0 : index
    %c0_9 = arith.constant 0 : index
    %18 = vector.load %arg5[%c0_8, %c0_9] : memref<32x128xf32, #tpu.memory_space<vmem>>, vector<32x128xf32>
    %cst_10 = arith.constant dense<0.000000e+00> : vector<8x128xf32>
    %19 = tpu.matmul %17, %18, %cst_10 {dimension_numbers = #tpu.dot_dimension_numbers<[1], [0], [0], [1], [0, 0, 1, 1], [], []>} : vector<8x32xf32>, vector<32x128xf32>, vector<8x128xf32> -> vector<8x128xf32>
    %20 = arith.addf %16, %19 : vector<8x128xf32>
    %c0_11 = arith.constant 0 : index
    %c0_12 = arith.constant 0 : index
    %21 = vector.load %arg11[%c0_11, %c0_12] : memref<8x32xf32, #tpu.memory_space<vmem>>, vector<8x32xf32>
    %22 = vector.extract_strided_slice %20 {offsets = [0, 0], sizes = [8, 32], strides = [1, 1]} : vector<8x128xf32> to vector<8x32xf32>
    %23 = arith.negf %22 : vector<8x32xf32>
    %24 = math.exp %23 : vector<8x32xf32>
    %cst_13 = arith.constant 1.000000e+00 : f32
    %25 = vector.broadcast %cst_13 : f32 to vector<8x32xf32>
    %26 = arith.addf %25, %24 : vector<8x32xf32>
    %27 = arith.divf %25, %26 : vector<8x32xf32>
    %28 = vector.extract_strided_slice %20 {offsets = [0, 32], sizes = [8, 32], strides = [1, 1]} : vector<8x128xf32> to vector<8x32xf32>
    %29 = arith.negf %28 : vector<8x32xf32>
    %30 = math.exp %29 : vector<8x32xf32>
    %cst_14 = arith.constant 1.000000e+00 : f32
    %31 = vector.broadcast %cst_14 : f32 to vector<8x32xf32>
    %32 = arith.addf %31, %30 : vector<8x32xf32>
    %33 = arith.divf %31, %32 : vector<8x32xf32>
    %34 = vector.extract_strided_slice %20 {offsets = [0, 64], sizes = [8, 32], strides = [1, 1]} : vector<8x128xf32> to vector<8x32xf32>
    %35 = math.tanh %34 : vector<8x32xf32>
    %36 = vector.extract_strided_slice %20 {offsets = [0, 96], sizes = [8, 32], strides = [1, 1]} : vector<8x128xf32> to vector<8x32xf32>
    %37 = arith.negf %36 : vector<8x32xf32>
    %38 = math.exp %37 : vector<8x32xf32>
    %cst_15 = arith.constant 1.000000e+00 : f32
    %39 = vector.broadcast %cst_15 : f32 to vector<8x32xf32>
    %40 = arith.addf %39, %38 : vector<8x32xf32>
    %41 = arith.divf %39, %40 : vector<8x32xf32>
    %42 = arith.mulf %33, %21 : vector<8x32xf32>
    %43 = arith.mulf %27, %35 : vector<8x32xf32>
    %44 = arith.addf %42, %43 : vector<8x32xf32>
    %45 = math.tanh %44 : vector<8x32xf32>
    %46 = arith.mulf %41, %45 : vector<8x32xf32>
    %c0_16 = arith.constant 0 : index
    %c0_17 = arith.constant 0 : index
    %47 = vector.load %arg10[%c0_16, %c0_17] : memref<8x32xf32, #tpu.memory_space<vmem>>, vector<8x32xf32>
    tpu.vector_store %arg10[%c0_16, %c0_17], %46 {strides = array<i32>} : memref<8x32xf32, #tpu.memory_space<vmem>>, vector<8x32xf32>,
    %c0_18 = arith.constant 0 : index
    %c0_19 = arith.constant 0 : index
    %48 = vector.load %arg11[%c0_18, %c0_19] : memref<8x32xf32, #tpu.memory_space<vmem>>, vector<8x32xf32>
    tpu.vector_store %arg11[%c0_18, %c0_19], %44 {strides = array<i32>} : memref<8x32xf32, #tpu.memory_space<vmem>>, vector<8x32xf32>,
    %c0_20 = arith.constant 0 : index
    %c0_21 = arith.constant 0 : index
    %49 = vector.load %arg6[%c0_20, %c0_21] : memref<32x32xf32, #tpu.memory_space<vmem>>, vector<32x32xf32>
    %cst_22 = arith.constant dense<0.000000e+00> : vector<8x32xf32>
    %50 = tpu.matmul %46, %49, %cst_22 {dimension_numbers = #tpu.dot_dimension_numbers<[1], [0], [0], [1], [0, 0, 1, 1], [], []>} : vector<8x32xf32>, vector<32x32xf32>, vector<8x32xf32> -> vector<8x32xf32>
    %c0_23 = arith.constant 0 : index
    %c0_24 = arith.constant 0 : index
    %51 = vector.load %arg7[%c0_23, %c0_24] : memref<1x32xf32, #tpu.memory_space<vmem>>, vector<1x32xf32>
    %52 = vector.broadcast %51 : vector<1x32xf32> to vector<8x32xf32>
    %53 = arith.addf %50, %52 : vector<8x32xf32>
    %c0_25 = arith.constant 0 : index
    %c0_26 = arith.constant 0 : index
    %c0_27 = arith.constant 0 : index
    %54 = vector.load %arg9[%c0_25, %c0_26, %c0_27] : memref<1x8x32xf32, #tpu.memory_space<vmem>>, vector<1x8x32xf32>
    %55 = vector.shape_cast %54 : vector<1x8x32xf32> to vector<8x32xf32>
    %56 = vector.shape_cast %53 : vector<8x32xf32> to vector<1x8x32xf32>
    tpu.vector_store %arg9[%c0_25, %c0_26, %c0_27], %56 {strides = array<i32>} : memref<1x8x32xf32, #tpu.memory_space<vmem>>, vector<1x8x32xf32>,
    %57 = tpu.iota {dimensions = array<i32: 1>} : vector<8x32xi32>
    %cst_28 = arith.constant dense<0xFF800000> : vector<8xf32>
    %58 = vector.multi_reduction <maximumf>, %53, %cst_28 [1] : vector<8x32xf32> to vector<8xf32>
    %59 = vector.shape_cast %58 : vector<8xf32> to vector<8x1xf32>
    %60 = vector.broadcast %59 : vector<8x1xf32> to vector<8x32xf32>
    %61 = arith.cmpf oeq, %53, %60 : vector<8x32xf32>
    %c32_i32 = arith.constant 32 : i32
    %62 = vector.broadcast %c32_i32 : i32 to vector<8x32xi32>
    %63 = arith.select %61, %57, %62 : vector<8x32xi1>, vector<8x32xi32>
    %cst_29 = arith.constant dense<2147483647> : vector<8xi32>
    %64 = vector.multi_reduction <minsi>, %63, %cst_29 [1] : vector<8x32xi32> to vector<8xi32>
    %65 = vector.shape_cast %64 : vector<8xi32> to vector<8x1xi32>
    %66 = vector.broadcast %65 : vector<8x1xi32> to vector<8x32xi32>
    %67 = arith.cmpi eq, %57, %66 : vector<8x32xi32>
    %68 = arith.extui %67 : vector<8x32xi1> to vector<8x32xi32>
    %69 = arith.sitofp %68 : vector<8x32xi32> to vector<8x32xf32>
    %c0_30 = arith.constant 0 : index
    %c0_31 = arith.constant 0 : index
    %70 = vector.load %arg8[%c0_30, %c0_31] : memref<32x128xf32, #tpu.memory_space<vmem>>, vector<32x128xf32>
    %cst_32 = arith.constant dense<0.000000e+00> : vector<8x128xf32>
    %71 = tpu.matmul %69, %70, %cst_32 {dimension_numbers = #tpu.dot_dimension_numbers<[1], [0], [0], [1], [0, 0, 1, 1], [], []>} : vector<8x32xf32>, vector<32x128xf32>, vector<8x128xf32> -> vector<8x128xf32>
    %c0_33 = arith.constant 0 : index
    %c0_34 = arith.constant 0 : index
    %72 = vector.load %arg12[%c0_33, %c0_34] : memref<8x128xf32, #tpu.memory_space<vmem>>, vector<8x128xf32>
    tpu.vector_store %arg12[%c0_33, %c0_34], %71 {strides = array<i32>} : memref<8x128xf32, #tpu.memory_space<vmem>>, vector<8x128xf32>,
    return
  }
  func.func @transform_0(%arg0: i32, %arg1: memref<7xi32, #tpu.memory_space<smem>>) -> (i32, i32, i32) {
    %c0_i32 = arith.constant 0 : i32
    %c0_i32_0 = arith.constant 0 : i32
    %c0_i32_1 = arith.constant 0 : i32
    return %arg0, %c0_i32, %c0_i32_0 : i32, i32, i32
  }
  func.func @transform_1(%arg0: i32, %arg1: memref<7xi32, #tpu.memory_space<smem>>) -> (i32, i32) {
    %c0_i32 = arith.constant 0 : i32
    %c0_i32_0 = arith.constant 0 : i32
    %c0_i32_1 = arith.constant 0 : i32
    return %c0_i32, %c0_i32_0 : i32, i32
  }
  func.func @transform_2(%arg0: i32, %arg1: memref<7xi32, #tpu.memory_space<smem>>) -> (i32, i32) {
    %c0_i32 = arith.constant 0 : i32
    %c0_i32_0 = arith.constant 0 : i32
    %c0_i32_1 = arith.constant 0 : i32
    return %c0_i32, %c0_i32_0 : i32, i32
  }
  func.func @transform_3(%arg0: i32, %arg1: memref<7xi32, #tpu.memory_space<smem>>) -> (i32, i32) {
    %c0_i32 = arith.constant 0 : i32
    %c0_i32_0 = arith.constant 0 : i32
    %c0_i32_1 = arith.constant 0 : i32
    return %c0_i32, %c0_i32_0 : i32, i32
  }
  func.func @transform_4(%arg0: i32, %arg1: memref<7xi32, #tpu.memory_space<smem>>) -> (i32, i32) {
    %c0_i32 = arith.constant 0 : i32
    %c0_i32_0 = arith.constant 0 : i32
    %c0_i32_1 = arith.constant 0 : i32
    return %c0_i32, %c0_i32_0 : i32, i32
  }
  func.func @transform_5(%arg0: i32, %arg1: memref<7xi32, #tpu.memory_space<smem>>) -> (i32, i32) {
    %c0_i32 = arith.constant 0 : i32
    %c0_i32_0 = arith.constant 0 : i32
    %c0_i32_1 = arith.constant 0 : i32
    return %c0_i32, %c0_i32_0 : i32, i32
  }
  func.func @transform_6(%arg0: i32, %arg1: memref<7xi32, #tpu.memory_space<smem>>) -> (i32, i32) {
    %c0_i32 = arith.constant 0 : i32
    %c0_i32_0 = arith.constant 0 : i32
    %c0_i32_1 = arith.constant 0 : i32
    return %c0_i32, %c0_i32_0 : i32, i32
  }
  func.func @transform_7(%arg0: i32, %arg1: memref<7xi32, #tpu.memory_space<smem>>) -> (i32, i32, i32) {
    %c0_i32 = arith.constant 0 : i32
    %c0_i32_0 = arith.constant 0 : i32
    %c0_i32_1 = arith.constant 0 : i32
    return %arg0, %c0_i32, %c0_i32_0 : i32, i32, i32
  }
}

</mosaic_0001>

<bundles_post_ra>
// kernel: _seq2seq_core.5
= control target key start
LH: loop header
LB: loop body
LE: loop exit
PB: predicated region body
PF: predicated region fallthrough
CT: control target
= control target key end

     0   :  { %vm31_vm0 = vcmask 130048   ;;  %s297_s1 = inlined_call_operand.vmem [shape: f32[16,128], index: 1, kind: input, shape index: {}]   ;;  %s298_s0 = inlined_call_operand.vmem [shape: f32[64,16], index: 0, kind: input, shape index: {}]   ;;  %s299_s2 = inlined_call_operand.vmem [shape: f32[1,128], index: 2, kind: input, shape index: {}]   ;;  %s300_s3 = inlined_call_operand.vmem [shape: f32[64,128], index: 3, kind: output, shape index: {}]  }
   0x1   :  { %v23_v0 = vld [vmem:[%s297_s1 + $0x8] sm:$0xff]  ;;  %v22_v1 = vld [vmem:[%s297_s1] sm:$0xff]  ;;  %v16_v6 = vld [vmem:[%s298_s0 + $0x10] sm:$0xff] }
   0x2   :  { %192 = vmatprep.subr.mxu0 %v23_v0  ;;  %208 = vmatprep.subr.mxu1 %v23_v0  ;;  %v14_v2 = vld [vmem:[%s298_s0] sm:$0xff]  ;;  %v15_v4 = vld [vmem:[%s298_s0 + $0x8] sm:$0xff]  ;;  %v20_v7 = vld [vmem:[%s298_s0 + $0x30] sm:$0xff] }
   0x3   :  { %193 = vmatpush3.msra.mxu0 %v23_v0  ;;  %210 = vmatpush3.msra.mxu1 %v23_v0  ;;  %v18_v3 = vld [vmem:[%s298_s0 + $0x20] sm:$0xff]  ;;  %v19_v5 = vld [vmem:[%s298_s0 + $0x28] sm:$0xff]  ;;  %v17_v8 = vld [vmem:[%s298_s0 + $0x18] sm:$0xff] }
   0x4   :  { %194 = vmatprep.subr.mxu0 %v22_v1  ;;  %209 = vmatprep.subr.mxu1 %v22_v1  ;;  %v21_v9 = vld [vmem:[%s298_s0 + $0x38] sm:$0xff]  ;;  %v173_v10 = vld [vmem:[%s299_s2] ss:$0 sm:$0xff] }
   0x5   :  { %195 = vmatpush3.msra.mxu0 %v22_v1  ;;  %211 = vmatpush3.msra.mxu1 %v22_v1 }
   0x6   :  { %196 = vmatprep.mubr.msk.f32.mxu0 %vm31_vm0, %v14_v2  ;;  %202 = vmatprep.mubr.msk.f32.mxu1 %vm31_vm0, %v18_v3 }
   0x7   :  { %197 = vmatmul.mubr.msk.f32.vlgmr.msra.gmra.mxu0 %vm31_vm0, %v15_v4  ;;  %203 = vmatmul.mubr.msk.f32.vlgmr.msra.gmra.mxu1 %vm31_vm0, %v19_v5 }
   0x8   :  { %199 = vmatprep.mubr.msk.f32.mxu0 %vm31_vm0, %v16_v6  ;;  %205 = vmatprep.mubr.msk.f32.mxu1 %vm31_vm0, %v20_v7 }
   0xb   :  { %200 = vmatmul.mubr.msk.f32.gmra.mxu0 %vm31_vm0, %v17_v8  ;;  %206 = vmatmul.mubr.msk.f32.gmra.mxu1 %vm31_vm0, %v21_v9 }
  0xc7   :  { %v198_v11 = vpop.f32.mrf.mxu0  ;;  %v204_v12 = vpop.f32.mrf.mxu1 }
  0xc8   :  { %v128_v13 = vadd.f32 %v198_v11, %v173_v10  ;;  %v148_v14 = vadd.f32 %v204_v12, %v173_v10 }
  0xc9   :  { %v122_v15 = vpop.f32.mrf.mxu0  ;;  %v142_v16 = vpop.f32.mrf.mxu1 }
  0xca   :  { %162 = vst [vmem:[%s300_s3 + $0x8] sm:$0xff] %v128_v13  ;;  %166 = vst [vmem:[%s300_s3 + $0x28] sm:$0xff] %v148_v14  ;;  %v123_v17 = vadd.f32 %v173_v10, %v122_v15  ;;  %v143_v18 = vadd.f32 %v173_v10, %v142_v16 }
  0xcb   :  { %v201_v19 = vpop.f32.mrf.mxu0  ;;  %v207_v20 = vpop.f32.mrf.mxu1 }
  0xcc   :  { %161 = vst [vmem:[%s300_s3] sm:$0xff] %v123_v17  ;;  %165 = vst [vmem:[%s300_s3 + $0x20] sm:$0xff] %v143_v18  ;;  %v138_v21 = vadd.f32 %v201_v19, %v173_v10  ;;  %v158_v22 = vadd.f32 %v207_v20, %v173_v10 }
  0xcd   :  { %v132_v23 = vpop.f32.mrf.mxu0  ;;  %v152_v24 = vpop.f32.mrf.mxu1 }
  0xce   :  { %164 = vst [vmem:[%s300_s3 + $0x18] sm:$0xff] %v138_v21  ;;  %168 = vst [vmem:[%s300_s3 + $0x38] sm:$0xff] %v158_v22  ;;  %v133_v25 = vadd.f32 %v173_v10, %v132_v23  ;;  %v153_v26 = vadd.f32 %v173_v10, %v152_v24 }
  0xd0   :  { %163 = vst [vmem:[%s300_s3 + $0x10] sm:$0xff] %v133_v25  ;;  %167 = vst [vmem:[%s300_s3 + $0x30] sm:$0xff] %v153_v26 }

// kernel: _seq2seq_core.8
= control target key start
LH: loop header
LB: loop body
LE: loop exit
PB: predicated region body
PF: predicated region fallthrough
CT: control target
= control target key end

     0   :  { %vm27_vm0 = vcmask 130048   ;;  %s211_s1 = inlined_call_operand.vmem [shape: f32[16,128], index: 1, kind: input, shape index: {}]   ;;  %s212_s0 = inlined_call_operand.vmem [shape: f32[32,16], index: 0, kind: input, shape index: {}]   ;;  %s213_s2 = inlined_call_operand.vmem [shape: f32[1,128], index: 2, kind: input, shape index: {}]   ;;  %s214_s3 = inlined_call_operand.vmem [shape: f32[32,128], index: 3, kind: output, shape index: {}]  }
   0x1   :  { %v19_v0 = vld [vmem:[%s211_s1 + $0x8] sm:$0xff]  ;;  %v18_v1 = vld [vmem:[%s211_s1] sm:$0xff]  ;;  %v16_v3 = vld [vmem:[%s212_s0 + $0x10] sm:$0xff] }
   0x2   :  { %144 = vmatprep.subr.mxu0 %v19_v0  ;;  %154 = vmatprep.subr.mxu1 %v19_v0  ;;  %v14_v2 = vld [vmem:[%s212_s0] sm:$0xff]  ;;  %v15_v4 = vld [vmem:[%s212_s0 + $0x8] sm:$0xff]  ;;  %v17_v5 = vld [vmem:[%s212_s0 + $0x18] sm:$0xff] }
   0x3   :  { %145 = vmatpush3.msra.mxu0 %v19_v0  ;;  %156 = vmatpush3.msra.mxu1 %v19_v0  ;;  %v133_v6 = vld [vmem:[%s213_s2] ss:$0 sm:$0xff] }
   0x4   :  { %146 = vmatprep.subr.mxu0 %v18_v1  ;;  %155 = vmatprep.subr.mxu1 %v18_v1 }
   0x5   :  { %147 = vmatpush3.msra.mxu0 %v18_v1  ;;  %157 = vmatpush3.msra.mxu1 %v18_v1 }
   0x6   :  { %148 = vmatprep.mubr.msk.f32.mxu0 %vm27_vm0, %v14_v2  ;;  %151 = vmatprep.mubr.msk.f32.mxu1 %vm27_vm0, %v16_v3 }
   0x7   :  { %149 = vmatmul.mubr.msk.f32.vlgmr.msra.gmra.mxu0 %vm27_vm0, %v15_v4  ;;  %152 = vmatmul.mubr.msk.f32.vlgmr.msra.gmra.mxu1 %vm27_vm0, %v17_v5 }
  0xc7   :  { %v150_v7 = vpop.f32.mrf.mxu0  ;;  %v153_v8 = vpop.f32.mrf.mxu1 }
  0xc8   :  { %v112_v9 = vadd.f32 %v150_v7, %v133_v6  ;;  %v122_v10 = vadd.f32 %v153_v8, %v133_v6 }
  0xc9   :  { %v106_v11 = vpop.f32.mrf.mxu0  ;;  %v116_v12 = vpop.f32.mrf.mxu1 }
  0xca   :  { %126 = vst [vmem:[%s214_s3 + $0x8] sm:$0xff] %v112_v9  ;;  %128 = vst [vmem:[%s214_s3 + $0x18] sm:$0xff] %v122_v10  ;;  %v107_v13 = vadd.f32 %v133_v6, %v106_v11  ;;  %v117_v14 = vadd.f32 %v133_v6, %v116_v12 }
  0xcc   :  { %125 = vst [vmem:[%s214_s3] sm:$0xff] %v107_v13  ;;  %127 = vst [vmem:[%s214_s3 + $0x10] sm:$0xff] %v117_v14 }

// kernel: _seq2seq_core.7
= control target key start
LH: loop header
LB: loop body
LE: loop exit
PB: predicated region body
PF: predicated region fallthrough
CT: control target
= control target key end

     0   :  { %v211_v0 = vmov 0.0   ;;  %vm30_vm0 = vcmask 130048   ;;  %vm212_vm1 = vmmov 0   ;;  %s298_s1 = inlined_call_operand.vmem [shape: f32[16,128], index: 1, kind: input, shape index: {}]   ;;  %s299_s0 = inlined_call_operand.vmem [shape: f32[56,16], index: 0, kind: input, shape index: {}]   ;;  %s300_s2 = inlined_call_operand.vmem [shape: f32[1,128], index: 2, kind: input, shape index: {}]   ;;  %s301_s3 = inlined_call_operand.vmem [shape: f32[56,128], index: 3, kind: output, shape index: {}]  }
   0x1   :  { %180 = vmatprep.subr.mxu0 %v211_v0  ;;  %v22_v1 = vld [vmem:[%s298_s1 + $0x8] sm:$0xff]  ;;  %205 = vmatprep.subr.mxu1 %v211_v0  ;;  %v21_v2 = vld [vmem:[%s298_s1] sm:$0xff]  ;;  %v16_v7 = vld [vmem:[%s299_s0 + $0x10] sm:$0xff] }
   0x2   :  { %181 = vmatpush3.msra.mxu0 %v22_v1  ;;  %207 = vmatpush3.msra.mxu1 %v22_v1  ;;  %v14_v3 = vld [vmem:[%s299_s0] sm:$0xff]  ;;  %v15_v5 = vld [vmem:[%s299_s0 + $0x8] sm:$0xff]  ;;  %v20_v8 = vld [vmem:[%s299_s0 + $0x30] sm:$0xff] }
   0x3   :  { %182 = vmatprep.subr.mxu0 %v211_v0  ;;  %184 = vmatprep.mubr.msk.f32.mxu0 %vm212_vm1, %v211_v0  ;;  %v18_v4 = vld [vmem:[%s299_s0 + $0x20] sm:$0xff]  ;;  %v19_v6 = vld [vmem:[%s299_s0 + $0x28] sm:$0xff]  ;;  %v17_v9 = vld [vmem:[%s299_s0 + $0x18] sm:$0xff] }
   0x4   :  { %183 = vmatpush3.msra.mxu0 %v21_v2  ;;  %206 = vmatprep.subr.mxu1 %v211_v0  ;;  %v163_v10 = vld [vmem:[%s300_s2] ss:$0 sm:$0xff] }
   0x5   :  { %185 = vmatmul.mubr.msk.f32.vlgmr.msra.gmra.mxu0 %vm30_vm0, %v14_v3  ;;  %208 = vmatpush3.msra.mxu1 %v21_v2 }
   0x6   :  { %196 = vmatprep.mubr.msk.f32.mxu1 %vm212_vm1, %v211_v0  ;;  %187 = vmatprep.mubr.msk.f32.mxu0 %vm212_vm1, %v211_v0 }
   0x7   :  { %197 = vmatmul.mubr.msk.f32.vlgmr.msra.gmra.mxu1 %vm30_vm0, %v18_v4 }
   0x8   :  { %199 = vmatprep.mubr.msk.f32.mxu1 %vm212_vm1, %v211_v0 }
   0x9   :  { %188 = vmatmul.mubr.msk.f32.gmra.mxu0 %vm30_vm0, %v15_v5 }
   0xa   :  { %190 = vmatprep.mubr.msk.f32.mxu0 %vm212_vm1, %v211_v0 }
   0xb   :  { %200 = vmatmul.mubr.msk.f32.gmra.mxu1 %vm30_vm0, %v19_v6 }
   0xc   :  { %202 = vmatprep.mubr.msk.f32.mxu1 %vm212_vm1, %v211_v0 }
   0xd   :  { %191 = vmatmul.mubr.msk.f32.gmra.mxu0 %vm30_vm0, %v16_v7 }
   0xe   :  { %193 = vmatprep.mubr.msk.f32.mxu0 %vm212_vm1, %v211_v0 }
   0xf   :  { %203 = vmatmul.mubr.msk.f32.gmra.mxu1 %vm30_vm0, %v20_v8 }
  0x11   :  { %194 = vmatmul.mubr.msk.f32.gmra.mxu0 %vm30_vm0, %v17_v9 }
  0xc5   :  { %v118_v11 = vpop.f32.mrf.mxu0 }
  0xc6   :  { %v119_v12 = vadd.f32 %v163_v10, %v118_v11 }
  0xc7   :  { %v186_v13 = vpop.f32.mrf.mxu0  ;;  %v138_v14 = vpop.f32.mrf.mxu1 }
  0xc8   :  { %152 = vst [vmem:[%s301_s3] sm:$0xff] %v119_v12  ;;  %v139_v15 = vadd.f32 %v163_v10, %v138_v14 }
  0xc9   :  { %v123_v16 = vpop.f32.mrf.mxu0  ;;  %v198_v17 = vpop.f32.mrf.mxu1 }
  0xca   :  { %156 = vst [vmem:[%s301_s3 + $0x20] sm:$0xff] %v139_v15  ;;  %v124_v18 = vadd.f32 %v163_v10, %v123_v16 }
  0xcb   :  { %v189_v19 = vpop.f32.mrf.mxu0  ;;  %v143_v20 = vpop.f32.mrf.mxu1 }
  0xcc   :  { %153 = vst [vmem:[%s301_s3 + $0x8] sm:$0xff] %v124_v18  ;;  %v144_v21 = vadd.f32 %v163_v10, %v143_v20 }
  0xcd   :  { %v128_v22 = vpop.f32.mrf.mxu0  ;;  %v201_v23 = vpop.f32.mrf.mxu1 }
  0xce   :  { %157 = vst [vmem:[%s301_s3 + $0x28] sm:$0xff] %v144_v21  ;;  %v129_v24 = vadd.f32 %v163_v10, %v128_v22 }
  0xcf   :  { %v192_v25 = vpop.f32.mrf.mxu0  ;;  %v148_v26 = vpop.f32.mrf.mxu1 }
  0xd0   :  { %154 = vst [vmem:[%s301_s3 + $0x10] sm:$0xff] %v129_v24  ;;  %v149_v27 = vadd.f32 %v163_v10, %v148_v26 }
  0xd1   :  { %v133_v28 = vpop.f32.mrf.mxu0  ;;  %v204_v29 = vpop.f32.mrf.mxu1 }
  0xd2   :  { %158 = vst [vmem:[%s301_s3 + $0x30] sm:$0xff] %v149_v27  ;;  %v134_v30 = vadd.f32 %v163_v10, %v133_v28 }
  0xd3   :  { %v195_v31 = vpop.f32.mrf.mxu0 }
  0xd4   :  { %155 = vst [vmem:[%s301_s3 + $0x18] sm:$0xff] %v134_v30 }

// kernel: _seq2seq_core.6
= control target key start
LH: loop header
LB: loop body
LE: loop exit
PB: predicated region body
PF: predicated region fallthrough
CT: control target
= control target key end

     0   :  { %s401_s12 = smov 0   ;;  %s444_s0 = inlined_call_operand.vmem [shape: f32[8,8,128], index: 0, kind: input, shape index: {}]   ;;  %s445_s1 = inlined_call_operand.vmem [shape: f32[32,128], index: 1, kind: input, shape index: {}]   ;;  %s446_s2 = inlined_call_operand.vmem [shape: f32[8,32], index: 2, kind: output, shape index: {0}]   ;;  %s447_s3 = inlined_call_operand.vmem [shape: f32[8,32], index: 3, kind: output, shape index: {1}]  }
   0x1 LB: > { %s407_s13 = sadd.s32 4294967295, %s373_s12   ;;  %p321_p0 = scmp.ge.s32.totalorder %s373_s12, 1  ;;  %s373_s12 = sphi %s401_s12, %s14_s12  }
   0x2   : > { %p129_p1 = scmp.lt.s32.totalorder %s373_s12, 9 }
   0x4   : > { %p130_p2 = pnand %p321_p0, %p129_p1 }
   0x5   : > { %p147_p3 = scmp.lt.s32.totalorder (!%p130_p2), %s407_s13, 7  ;;  %p323_p4 = scmp.ne.s32.totalorder (!%p130_p2), %s407_s13, 0 }
   0x6   : > { %133 = sbr.rel (%p130_p2) target bundleno = 719 (0x2cf), region = 28 }
   0xb   : > { %s148_s14 = scalar_select %p147_p3, %s407_s13, 7 }
   0xc   : > { %154 = sbr.rel (%p323_p4) target bundleno = 19 (0x13), region = 32 }
   0xd   : > { %s322_s15 = sshll.u32 %s148_s14, 3 }
   0xe   : > { %s150_s18 = scalar_lea.vmem %s444_s0, %s322_s15 }
  0x11   : > { %vm155_vm0 = vcmask 261120   ;;  %v375_v0 = vmov 0.0  }
  0x12   : > { %156 = vst.msk [vmem:[#allocation2] sm:$0xff] %vm155_vm0, %v375_v0  ;;  %157 = vst.msk [vmem:[#allocation3] sm:$0xff] %vm155_vm0, %v375_v0 }
  0x13 PF: > { %v163_v1 = vld [vmem:[%s445_s1 + $0x18] sm:$0xff]  ;;  %v376_v2 = vmov 0.0   ;;  %v162_v3 = vld [vmem:[%s445_s1 + $0x10] sm:$0xff]  ;;  %vm377_vm1 = vmmov 0   ;;  %v161_v4 = vld [vmem:[%s445_s1 + $0x8] sm:$0xff]  ;;  %vm164_vm2 = vcmask 261120  }
  0x14   : > { %334 = vmatprep.subr.mxu0 %v376_v2  ;;  %342 = vmatprep.mubr.msk.f32.mxu0 %vm377_vm1, %v376_v2  ;;  %v160_v5 = vld [vmem:[%s445_s1] sm:$0xff]  ;;  %s378_s27 = smov 64   ;;  %s379_s28 = smov 32  }
  0x15   : > { %335 = vmatpush3.msra.mxu0 %v163_v1  ;;  %v158_v7 = vld [vmem:[%s150_s18] sm:$0xff]  ;;  %s380_s29 = smov 96   ;;  %p326_p5 = scmp.ne.s32.totalorder %s407_s13, 7 }
  0x16   : > { %336 = vmatprep.subr.mxu0 %v376_v2 }
  0x17   : > { %337 = vmatpush3.msra.mxu0 %v162_v3 }
  0x18   : > { %338 = vmatprep.subr.mxu0 %v376_v2 }
  0x19   : > { %339 = vmatpush3.msra.mxu0 %v161_v4  ;;  %v159_v6 = vld [vmem:[#allocation2] sm:$0xff]  ;;  %v239_v12 = vld [vmem:[#allocation3] sm:$0xff] }
  0x1a   : > { %340 = vmatprep.subr.mxu0 %v376_v2 }
  0x1b   : > { %341 = vmatpush3.msra.mxu0 %v160_v5 }
  0x1c   : > { %343 = vmatmul.mubr.msk.f32.vlgmr.msra.gmra.mxu0 %vm164_vm2, %v159_v6 }
  0xdc   : > { %v234_v8 = vpop.f32.mrf.mxu0 }
  0xdd   : > { %v238_v9 = vadd.f32 %v234_v8, %v158_v7 }
  0xde   : > { %v344_v10 = vpop.f32.mrf.mxu0 }
  0xdf   : > { %359 = vtanh.f32 %v238_v9  ;;  %v325_v13 = vmul.f32 -1.442695, %v238_v9 }
  0xe1   : > { %361 = vpow2.f32 %v325_v13 }
  0xec   : > { %v360_v11 = vpop.eup %359 }
  0xed   : > { %253 = vrot.lane.b32.xlu0 %v360_v11, %s378_s27 }
  0xee   : > { %v362_v14 = vpop.eup %361 }
  0xef   : > { %v243_v15 = vadd.f32 1.0, %v362_v14 }
  0xf1   : > { %248 = vrot.lane.b32.xlu0 %v239_v12, %s379_s28  ;;  %363 = vrcp.f32 %v243_v15 }
  0xfe   : > { %v364_v16 = vpop.eup %363 }
 0x15f   : > { %v254_v17 = vpop.permute.xlu0 %253 }
 0x160   : > { %v256_v18 = vmul.f32 %v364_v16, %v254_v17 }
 0x162   : > { %258 = vrot.lane.b32.xlu1 %v256_v18, %s379_s28 }
 0x163   : > { %v249_v19 = vpop.permute.xlu0 %248 }
 0x164   : > { %v251_v20 = vmul.f32 %v364_v16, %v249_v19 }
 0x1d4   : > { %v259_v21 = vpop.permute.xlu1 %258 }
 0x1d5   : > { %v261_v22 = vadd.f32 %v259_v21, %v251_v20 }
 0x1d7   : > { %365 = vtanh.f32 %v261_v22 }
 0x1e4   : > { %v366_v23 = vpop.eup %365 }
 0x1e5   : > { %264 = vrot.lane.b32.xlu1 %v366_v23, %s378_s27 }
 0x1e9   : > { %274 = vrot.lane.b32.xlu1 %v261_v22, %s380_s29 }
 0x257   : > { %v265_v24 = vpop.permute.xlu1 %264 }
 0x258   : > { %v267_v25 = vmul.f32 %v364_v16, %v265_v24 }
 0x25a   : > { %269 = vrot.lane.b32.xlu0 %v267_v25, %s379_s28 }
 0x25b   : > { %v275_v26 = vpop.permute.xlu1 %274 }
 0x25c   : > { %277 = vst.msk [vmem:[#allocation3] sm:$0xff] %vm164_vm2, %v275_v26 }
 0x2c9   : > { %281 = sbr.rel (%p326_p5) target bundleno = 719 (0x2cf), region = 36 }
 0x2cc   : > { %v270_v27 = vpop.permute.xlu0 %269 }
 0x2cd   : > { %272 = vst.msk [vmem:[#allocation2] sm:$0xff] %vm164_vm2, %v270_v27 }
 0x2ce   : > { %282 = vst.msk [vmem:[%s446_s2] sm:$0xff] %vm164_vm2, %v270_v27  ;;  %283 = vst.msk [vmem:[%s447_s3] sm:$0xff] %vm164_vm2, %v275_v26 }
 0x2cf PF: > { %s14_s12 = sadd.s32 1, %s373_s12  }
 0x2d0   : > { %p11_p6 = scmp.ge.s32.totalorder %s14_s12, 10  }
 0x2d2   :  { %13 = sbr.rel (!%p11_p6) target bundleno = 1 (0x1), region = 70 }

// kernel: _seq2seq_core.9
= control target key start
LH: loop header
LB: loop body
LE: loop exit
PB: predicated region body
PF: predicated region fallthrough
CT: control target
= control target key end

     0   :  { %s1113_s0 = inlined_call_operand.vmem [shape: s32[7], index: 0, kind: input, shape index: {}]   ;;  %s1114_s1 = inlined_call_operand.vmem [shape: f32[7,8,128], index: 1, kind: input, shape index: {}]   ;;  %s1115_s2 = inlined_call_operand.vmem [shape: f32[8,32], index: 2, kind: input, shape index: {}]   ;;  %s1116_s3 = inlined_call_operand.vmem [shape: f32[8,32], index: 3, kind: input, shape index: {}]   ;;  %s1117_s4 = inlined_call_operand.vmem [shape: f32[32,128], index: 4, kind: input, shape index: {}]   ;;  %s1118_s5 = inlined_call_operand.vmem [shape: f32[32,32], index: 5, kind: input, shape index: {}]   ;;  %s1119_s6 = inlined_call_operand.vmem [shape: f32[1,32], index: 6, kind: input, shape index: {}]   ;;  %s1120_s7 = inlined_call_operand.vmem [shape: f32[32,128], index: 7, kind: input, shape index: {}]   ;;  %s1121_s8 = inlined_call_operand.hbm [shape: f32[7,8,32], index: 8, kind: output, shape index: {}]  }
   0x1   :  { %s13_s29 = sshll.u32 %s1113_s0, 4  ;;  %s14_s29 = int_to_ptr.vmem [resolvable:$true] %s13_s29 }
   0x2   :  { %s801_s30 = scalar_lea.vmem %s14_s29, 16  ;;  %p806_p1 = scmp.lt.s32.totalorder %s14_s29, %s14_s29 }
   0x3   :  { %p802_p0 = scmp.ne.s32.totalorder %s14_s29, %s801_s30  ;;  %p807_p2 = scmp.lt.s32.totalorder %s801_s30, %s801_s30 }
   0x5   :  { %p808_p3 = por %p807_p2, %p806_p1 }
   0x7   :  { %p809_p4 = pnand %p808_p3, %p802_p0 }
   0x9   :  { %812 = shalt.err (!%p809_p4)  }
   0xa   :  { %s877_s9 = smov [#allocation6]  }
   0xb   :  { %16 = dma.vmem_to_smem %s14_s29, 16, %s877_s9, [#allocation5] }
   0xc   :  { %855 = dma.done.wait [#allocation5], 16 }
   0xd   :  { %856 = vsyncadd [#allocation5], 4294967280 }
   0xe   :  { %18 = sfence }
   0xf   :  { %19 = vsyncpa [#allocation8], 0 }
  0x10   :  { %21 = vsyncpa [#allocation8 + $0x1], 0  ;;  %s933_s10 = smov 0   ;;  %s935_s11 = smov 0  }
  0x11   :  { %s937_s0 = smov 0   ;;  %s939_s12 = smov 0  }
  0x12 LB: > { %s954_s13 = sadd.s32 4294967295, %s875_s12   ;;  %s682_s14 = sadd.s32 4294967294, %s875_s12   ;;  %s875_s12 = sphi %s939_s12, %s1127_s12   ;;  %s871_s0 = sphi %s937_s0, %s1126_s0   ;;  %s867_s11 = sphi %s935_s11, %s1125_s11   ;;  %s863_s10 = sphi %s933_s10, %s1124_s10  }
  0x13   : > { %s958_s15 = sadd.s32 1, %s875_s12   ;;  %s186_s16 = sadd.s32 1, %s871_s0 }
  0x14   : > { %s183_s17 = ssub.s32 %s875_s12, %s958_s15  ;;  %p196_p5 = scmp.ne.s32.totalorder %s871_s0, %s867_s11 }
  0x15   : > { %p184_p6 = scmp.eq.s32.totalorder %s183_s17, 0  ;;  %p197_p7 = scmp.eq.s32.totalorder %s954_s13, 6 }
  0x16   : > { %p202_p8 = scmp.ne.s32.totalorder %s867_s11, %s863_s10  ;;  %p203_p9 = scmp.eq.s32.totalorder %s682_s14, 6 }
  0x17   : > { %s969_s18 = scalar_select %p184_p6, %s871_s0, %s186_s16  }
  0x18   : > { %p971_p10 = por %p197_p7, %p196_p5  ;;  %p975_p11 = por %p203_p9, %p202_p8 }
  0x19   : > { %p685_p12 = scmp.ge.s32.totalorder %s875_s12, 1  ;;  %p246_p13 = scmp.lt.s32.totalorder %s875_s12, 8 }
  0x1b   : > { %p247_p0 = pnand %p685_p12, %p246_p13 }
  0x1c   : > { %s274_s21 = sand.u32 (!%p247_p0), 1, %s867_s11   ;;  %p277_p1 = scmp.lt.s32.totalorder (!%p247_p0), %s954_s13, 6 }
  0x1d   : > { %250 = sbr.rel (%p247_p0) target bundleno = 1561 (0x619), region = 48  ;;  %s985_s22 = sshll.u32 (!%p247_p0), %s274_s21, 3 }
  0x1e   : > { %s276_s28 = scalar_lea.vmem (!%p247_p0), [#allocation7], %s985_s22  ;;  %p688_p2 = scmp.ne.s32.totalorder (!%p247_p0), %s954_s13, 0 }
  0x22   : > { %s278_s23 = scalar_select %p277_p1, %s954_s13, 6 }
  0x23   : > { %284 = sbr.rel (%p688_p2) target bundleno = 43 (0x2b), region = 52 }
  0x24   : > { %s687_s24 = sshll.u32 %s278_s23, 3 }
  0x25   : > { %s991_s27 = scalar_lea.vmem %s1114_s1, %s687_s24 }
  0x28   : > { %v285_v0 = vld [vmem:[%s1115_s2] sm:$0xff]  ;;  %vm286_vm0 = vcmask 261120   ;;  %v878_v2 = vmov 0.0  }
  0x29   : > { %v288_v1 = vld [vmem:[%s1116_s3] sm:$0xff]  ;;  %287 = vst.msk [vmem:[#allocation2] sm:$0xff] %vm286_vm0, %v285_v0  ;;  %290 = vst [vmem:[#allocation4] sm:$0xff] %v878_v2 }
  0x2a   : > { %289 = vst.msk [vmem:[#allocation3] sm:$0xff] %vm286_vm0, %v288_v1 }
  0x2b PF: > { %v307_v3 = vld [vmem:[%s1117_s4 + $0x18] sm:$0xff]  ;;  %v879_v4 = vmov 0.0   ;;  %v306_v5 = vld [vmem:[%s1117_s4 + $0x10] sm:$0xff]  ;;  %vm880_vm1 = vmmov 0   ;;  %v305_v6 = vld [vmem:[%s1117_s4 + $0x8] sm:$0xff]  ;;  %vm308_vm2 = vcmask 261120   ;;  %v506_v44 = vlaneseq }
  0x2c   : > { %714 = vmatprep.subr.mxu0 %v879_v4  ;;  %722 = vmatprep.mubr.msk.f32.mxu0 %vm880_vm1, %v879_v4  ;;  %v304_v7 = vld [vmem:[%s1117_s4] sm:$0xff]  ;;  %s291_s9 = sld [smem:[#allocation6 + %s954_s13]]  ;;  %s881_s23 = smov 64   ;;  %v425_v31 = vld [vmem:[%s1118_s5 + $0x18] sm:$0xff]  ;;  %v424_v32 = vld [vmem:[%s1118_s5 + $0x10] sm:$0xff] }
  0x2d   : > { %715 = vmatpush3.msra.mxu0 %v307_v3  ;;  %725 = vmatprep.subr.mxu1 %v879_v4  ;;  %v295_v9 = vld [vmem:[%s991_s27] sm:$0xff]  ;;  %s882_s24 = smov 32   ;;  %v423_v33 = vld [vmem:[%s1118_s5 + $0x8] sm:$0xff]  ;;  %v507_v45 = vand.u32 127, %v506_v44  ;;  %v534_v52 = vld [vmem:[%s1120_s7 + $0x18] sm:$0xff]  ;;  %s623_s27 = sshll.u32 %s276_s28, 4  ;;  %s624_s27 = int_to_ptr.vmem [resolvable:$true] %s623_s27 }
  0x2e   : > { %716 = vmatprep.subr.mxu0 %v879_v4  ;;  %733 = vmatprep.mubr.msk.f32.mxu1 %vm880_vm1, %v879_v4  ;;  %v422_v34 = vld [vmem:[%s1118_s5] sm:$0xff]  ;;  %v533_v57 = vld [vmem:[%s1120_s7 + $0x10] sm:$0xff]  ;;  %v532_v58 = vld [vmem:[%s1120_s7 + $0x8] sm:$0xff]  ;;  %s610_s26 = scalar_lea.sflag [#allocation8], %s274_s21  ;;  %s813_s29 = scalar_lea.vmem %s624_s27, 128 }
  0x2f   : > { %717 = vmatpush3.msra.mxu0 %v306_v5  ;;  %726 = vmatpush3.msra.mxu1 %v425_v31  ;;  %v691_v39 = vld [vmem:[%s1119_s6] ss:$0 sm:$0xff]  ;;  %p814_p4 = scmp.ne.s32.totalorder %s624_s27, %s813_s29  ;;  %s884_s30 = smov [#allocation7]  }
  0x30   : > { %718 = vmatprep.subr.mxu0 %v879_v4  ;;  %v303_v8 = vld [vmem:[#allocation2] sm:$0xff]  ;;  %v299_v11 = vld [vmem:[#allocation4] sm:$0xff]  ;;  %727 = vmatprep.subr.mxu1 %v879_v4 }
  0x31   : > { %719 = vmatpush3.msra.mxu0 %v305_v6  ;;  %v383_v20 = vld [vmem:[#allocation3] sm:$0xff]  ;;  %728 = vmatpush3.msra.mxu1 %v424_v32  ;;  %v531_v59 = vld [vmem:[%s1120_s7] sm:$0xff]  ;;  %p815_p5 = pnand %p814_p4, %p971_p10 }
  0x32   : > { %720 = vmatprep.subr.mxu0 %v879_v4  ;;  %p292_p3 = scmp.gt.s32.totalorder %s291_s9, 0  ;;  %729 = vmatprep.subr.mxu1 %v879_v4  ;;  %s817_s9 = sshll.u32 %s884_s30, 4  ;;  %s818_s9 = int_to_ptr.vmem [resolvable:$false] %s817_s9 }
  0x33   : > { %721 = vmatpush3.msra.mxu0 %v304_v7  ;;  %730 = vmatpush3.msra.mxu1 %v423_v33  ;;  %p816_p6 = pneg %p815_p5  ;;  %p820_p7 = scmp.lt.s32.totalorder %s624_s27, %s818_s9 }
  0x34   : > { %723 = vmatmul.mubr.msk.f32.vlgmr.msra.gmra.mxu0 %vm308_vm2, %v303_v8  ;;  %736 = vmatprep.subr.mxu0 %v879_v4  ;;  %s293_s14 = scalar_select %p292_p3, 1, 0 }
  0x35   : > { %744 = vmatprep.mubr.msk.f32.mxu0 %vm880_vm1, %v879_v4  ;;  %731 = vmatprep.subr.mxu1 %v879_v4 }
  0x36   : > { %s294_s16 = scvt.s32.f32 %s293_s14  ;;  %732 = vmatpush3.msra.mxu1 %v422_v34  ;;  %737 = vmatpush3.msra.mxu0 %v534_v52  ;;  %s819_s14 = scalar_lea.vmem %s818_s9, 256 }
  0x37   : > { %738 = vmatprep.subr.mxu0 %v879_v4  ;;  %p821_p8 = scmp.lt.s32.totalorder %s819_s14, %s813_s29 }
  0x38   : > { %s298_s17 = ssub.f32 1.0, %s294_s16  ;;  %v296_v10 = vstv %s294_s16  ;;  %739 = vmatpush3.msra.mxu0 %v533_v57 }
  0x39   : > { %v297_v13 = vmul.f32 %v296_v10, %v295_v9  ;;  %740 = vmatprep.subr.mxu0 %v879_v4  ;;  %p822_p9 = por %p821_p8, %p820_p7 }
  0x3a   : > { %v300_v12 = vstv %s298_s17  ;;  %741 = vmatpush3.msra.mxu0 %v532_v58  ;;  %s696_s17 = sshll.u32 %s954_s13, 7 }
  0x3b   : > { %v301_v14 = vmul.f32 %v300_v12, %v299_v11  ;;  %742 = vmatprep.subr.mxu0 %v879_v4  ;;  %s621_s25 = scalar_lea.hbm %s1121_s8, %s696_s17  ;;  %p823_p12 = pnand %p822_p9, %p816_p6 }
  0x3c   : > { %743 = vmatpush3.msra.mxu0 %v531_v59 }
  0x3d   : > { %v302_v15 = vadd.f32 %v301_v14, %v297_v13 }
  0xf4   : > { %v378_v16 = vpop.f32.mrf.mxu0 }
  0xf5   : > { %v382_v17 = vadd.f32 %v378_v16, %v302_v15 }
  0xf6   : > { %v724_v18 = vpop.f32.mrf.mxu0 }
  0xf7   : > { %793 = vtanh.f32 %v382_v17  ;;  %v690_v21 = vmul.f32 -1.442695, %v382_v17 }
  0xf9   : > { %795 = vpow2.f32 %v690_v21 }
 0x104   : > { %v794_v19 = vpop.eup %793 }
 0x105   : > { %397 = vrot.lane.b32.xlu0 %v794_v19, %s881_s23 }
 0x106   : > { %v796_v22 = vpop.eup %795 }
 0x107   : > { %v387_v23 = vadd.f32 1.0, %v796_v22 }
 0x109   : > { %392 = vrot.lane.b32.xlu0 %v383_v20, %s882_s24  ;;  %797 = vrcp.f32 %v387_v23 }
 0x116   : > { %v798_v24 = vpop.eup %797 }
 0x177   : > { %v398_v25 = vpop.permute.xlu0 %397 }
 0x178   : > { %v400_v26 = vmul.f32 %v798_v24, %v398_v25 }
 0x17a   : > { %402 = vrot.lane.b32.xlu1 %v400_v26, %s882_s24 }
 0x17b   : > { %v393_v27 = vpop.permute.xlu0 %392 }
 0x17c   : > { %v395_v28 = vmul.f32 %v798_v24, %v393_v27 }
 0x1ec   : > { %v403_v29 = vpop.permute.xlu1 %402 }
 0x1ed   : > { %v405_v30 = vadd.f32 %v403_v29, %v395_v28 }
 0x1ef   : > { %799 = vtanh.f32 %v405_v30 }
 0x1fc   : > { %v800_v35 = vpop.eup %799 }
 0x1fd   : > { %408 = vrot.lane.b32.xlu1 %v800_v35, %s881_s23  ;;  %s883_s23 = smov 96  }
 0x26f   : > { %v409_v36 = vpop.permute.xlu1 %408 }
 0x270   : > { %v411_v37 = vmul.f32 %v798_v24, %v409_v36 }
 0x272   : > { %413 = vrot.lane.b32.xlu0 %v411_v37, %s882_s24 }
 0x2e4   : > { %v414_v38 = vpop.permute.xlu0 %413 }
 0x2e5   : > { %416 = vst.msk [vmem:[#allocation2] sm:$0xff] %vm308_vm2, %v414_v38  ;;  %734 = vmatmul.mubr.msk.f32.vlgmr.msra.gmra.mxu1 %vm308_vm2, %v414_v38 }
 0x3a5   : > { %v501_v40 = vpop.f32.mrf.mxu1 }
 0x3a6   : > { %v502_v41 = vadd.f32 %v691_v39, %v501_v40 }
 0x3a7   : > { %v735_v42 = vpop.f32.mrf.mxu1 }
 0x3a8   : > { %505 = vst.msk [vmem:[%s276_s28] sm:$0xff] %vm308_vm2, %v502_v41  ;;  %v508_v43 = vsel %vm308_vm2, %v502_v41, -inf }
 0x3a9   : > { %509 = vmax.xlane.f32.xlu1 %v508_v43 }
 0x3ba   : > { %418 = vrot.lane.b32.xlu1 %v405_v30, %s883_s23 }
 0x432   : > { %v510_v46 = vpop.xlane.xlu1 %509 }
 0x433   : > { %vm511_vm3 = vcmp.eq.f32.partialorder %v502_v41, %v510_v46 }
 0x434   : > { %v512_v47 = vsel %vm511_vm3, %v507_v45, 32 }
 0x435   : > { %v513_v48 = vsel %vm308_vm2, %v512_v47, 2147483647 }
 0x436   : > { %v419_v49 = vpop.permute.xlu1 %418  ;;  %v515_v50 = vshra.s32 %v513_v48, 16  ;;  %v514_v53 = vand.u32 65535, %v513_v48 }
 0x437   : > { %421 = vst.msk [vmem:[#allocation3] sm:$0xff] %vm308_vm2, %v419_v49 }
 0x438   : > { %v517_v51 = vcvt.s32.f32 %v515_v50  ;;  %v516_v55 = vcvt.s32.f32 %v514_v53 }
 0x43a   : > { %518 = vmin.xlane.f32.xlu0 %v517_v51 }
 0x4c3   : > { %v519_v54 = vpop.xlane.xlu0 %518 }
 0x4c4   : > { %vm520_vm4 = vcmp.eq.f32.partialorder %v517_v51, %v519_v54  ;;  %v525_v60 = vcvt.f32.s32 %v519_v54 }
 0x4c5   : > { %v521_v56 = vsel %vm520_vm4, %v516_v55, inf }
 0x4c6   : > { %522 = vmin.xlane.f32.xlu0 %v521_v56  ;;  %v526_v62 = vshll.u32 %v525_v60, 16 }
 0x54f   : > { %v523_v61 = vpop.xlane.xlu0 %522 }
 0x550   : > { %v524_v63 = vcvt.f32.s32 %v523_v61 }
 0x552   : > { %v527_v0 = vadd.s32 %v526_v62, %v524_v63 }
 0x554   : > { %vm528_vm5 = vcmp.eq.s32.totalorder %v507_v45, %v527_v0 }
 0x555   : > { %v693_v1 = vsel %vm528_vm5, 1.0, %v879_v4 }
 0x556   : > { %745 = vmatmul.mubr.msk.f32.vlgmr.msra.gmra.mxu0 %vm308_vm2, %v693_v1 }
 0x557   : > { %826 = shalt.err (!%p823_p12)
}
 0x558   : > { %s827_s13 = scalar_lea.hbm %s621_s25, 128  ;;  %s831_s28 = scalar_lea.hbm %s1121_s8, 896 }
 0x559   : > { %p828_p13 = scmp.ne.s32.totalorder %s621_s25, %s827_s13  ;;  %p832_p2 = scmp.lt.s32.totalorder %s621_s25, %s1121_s8 }
 0x55a   : > { %p833_p3 = scmp.lt.s32.totalorder %s831_s28, %s827_s13 }
 0x55b   : > { %p829_p0 = pnand %p828_p13, %p971_p10 }
 0x55c   : > { %p834_p4 = por %p833_p3, %p832_p2 }
 0x55d   : > { %p830_p1 = pneg %p829_p0 }
 0x55f   : > { %p835_p5 = pnand %p834_p4, %p830_p1 }
 0x561   : > { %838 = shalt.err (!%p835_p5)
}
 0x562   : > { %747 = dma.vmem_to_hbm [thread:$0]  (%p971_p10), %s624_s27, 128, %s621_s25, %s610_s26  }
 0x616   : > { %v604_v2 = vpop.f32.mrf.mxu0 }
 0x617   : > { %608 = vst [vmem:[#allocation4] sm:$0xff] %v604_v2 }
 0x618   : > { %v746_v3 = vpop.f32.mrf.mxu0 }
 0x619 PF: > { %p753_p6 = scmp.ge.s32.totalorder %s875_s12, 2  ;;  %s635_s23 = sand.u32 1, %s863_s10  }
 0x61a   : > { %s636_s24 = scalar_lea.sflag [#allocation8], %s635_s23 }
 0x61b   : > { %p750_p7 = pnand %p753_p6, %p975_p11 }
 0x61d   : > { %p751_p8 = pneg %p750_p7 }
 0x61f   : > { %858 = dma.done.wait (%p751_p8), %s636_s24, 128  }
 0x620   : > { %860 = vsyncadd (%p751_p8), %s636_s24, 4294967168  ;;  %p24_p10 = scmp.ge.s32.totalorder %s958_s15, 9   ;;  %s1124_s10 = smov %s867_s11 }
 0x621   : > { %s1125_s11 = smov %s871_s0  ;;  %s1126_s0 = smov %s969_s18 }
 0x622   : > { %s1127_s12 = smov %s958_s15  ;;  %26 = sbr.rel (!%p24_p10) target bundleno = 18 (0x12), region = 87 }
 0x627   :  { %641 = vsyncpa [#allocation8], 1 }
 0x628   :  { %643 = vsyncpa [#allocation8 + $0x1], 1 }

</bundles_post_ra>
